<compile_context>
chip_gen: v7x
topology: tpu7x:2x2x1
jax: 0.10.0
libtpu: 0.0.40
codegen_flags: <defaults>
</compile_context>

<pallas_src>
import functools
import math

import jax
import jax.numpy as jnp
from jax.experimental import pallas as pl
from jax.experimental.pallas import tpu as pltpu


# ---------------------------------------------------------------------------
# Hardware-aware sizing
# ---------------------------------------------------------------------------

def _round_up(x, m):
    return ((x + m - 1) // m) * m


def _tpu_memory_and_megacore():
    """(per-core VMEM bytes, has-2-TensorCores) with conservative fallbacks."""
    vmem_cap = 64 * 1024 * 1024          # safe everywhere (v7x per-TC VMEM)
    megacore = False
    try:
        info = pltpu.get_tpu_info()
        cap = int(getattr(info, "vmem_capacity_bytes", vmem_cap))
        vmem_cap = max(32 * 1024 * 1024, min(cap, 256 * 1024 * 1024))
    except Exception:
        pass
    try:
        kind = jax.devices()[0].device_kind.lower()
        megacore = ("v7" in kind) or ("v4" in kind) or ("v5p" in kind)
    except Exception:
        pass
    return vmem_cap, megacore


_VMEM_CAP, _MEGACORE = _tpu_memory_and_megacore()
_VMEM_LIMIT = int(min(_VMEM_CAP // 2, 64 * 1024 * 1024))   # 64MiB v5e/v6e, 32MiB v7x
_ATTN_VMEM_BUDGET = _VMEM_LIMIT // 2


# ---------------------------------------------------------------------------
# 1x1 convolution, channels-first: out[b, :, p] = W @ x[b, :, p] + bias
# ---------------------------------------------------------------------------

def _pw_conv_kernel(x_ref, w_ref, b_ref, o_ref, *, mxu_dtype=None):
    cdt = jnp.float32 if mxu_dtype is None else mxu_dtype
    x = x_ref[0].astype(cdt)                     # (Cin, TM)
    w = w_ref[...].astype(cdt)                   # (Cout, Cin)
    acc = jnp.dot(w, x, preferred_element_type=jnp.float32)
    o_ref[0] = (acc + b_ref[...].astype(jnp.float32)).astype(o_ref.dtype)


def _pick_pixel_tile(m, target=2048):
    """Largest lane-aligned tile <= target dividing m (full dim if m small)."""
    if m <= target:
        return m
    for tm in range((target // 128) * 128, 0, -128):
        if m % tm == 0:
            return tm
    return target                                # rare: caller pads the tail


def pointwise_conv_cf(x_cf, w, b, *, tm_target=2048, mxu_dtype=None,
                      out_dtype=None):
    """x_cf: (B, Cin, M) -> (B, Cout, M); pixels stay on the lane axis."""
    B, Cin, M = x_cf.shape
    Cout = w.shape[0]
    out_dtype = out_dtype or x_cf.dtype
    tm = _pick_pixel_tile(M, tm_target)
    Mp = pl.cdiv(M, tm) * tm
    if Mp != M:
        # TODO(synk): replace with an in-kernel masked tail store.
        x_cf = jnp.pad(x_cf, ((0, 0), (0, 0), (0, Mp - M)))
    out = pl.pallas_call(
        functools.partial(_pw_conv_kernel, mxu_dtype=mxu_dtype),
        out_shape=jax.ShapeDtypeStruct((B, Cout, Mp), out_dtype),
        grid=(B, Mp // tm),
        in_specs=[
            pl.BlockSpec((1, Cin, tm), lambda bi, mi: (bi, 0, mi)),
            pl.BlockSpec((Cout, Cin), lambda bi, mi: (0, 0)),
            pl.BlockSpec((Cout, 1), lambda bi, mi: (0, 0)),
        ],
        out_specs=pl.BlockSpec((1, Cout, tm), lambda bi, mi: (bi, 0, mi)),
        compiler_params=pltpu.CompilerParams(
            dimension_semantics=("parallel", "parallel"),
            vmem_limit_bytes=_VMEM_LIMIT),
    )(x_cf, w, b.reshape(Cout, 1))
    return out[:, :, :M] if Mp != M else out


# ---------------------------------------------------------------------------
# Packed window self-attention.
# q, v: (N, c, M); every contiguous L-slice of the last axis is one window.
# Blocks are (NB, c, GP) with GP a multiple of L; windows inside a block are
# kept independent with a block-diagonal additive mask, so the softmax runs at
# full lane occupancy and each block issues one large matmul pair.
# ---------------------------------------------------------------------------

def _window_attn_kernel(q_ref, v_ref, o_ref, *, L, mxu_dtype=None):
    cdt = jnp.float32 if mxu_dtype is None else mxu_dtype
    q = q_ref[...].astype(cdt)                    # (NB, c, GP) - single cast
    v = v_ref[...].astype(cdt)
    GP = q_ref.shape[-1]
    # s[n, l, m] = sum_c q[n, c, l] * q[n, c, m]
    s = jnp.einsum("ncl,ncm->nlm", q, q, preferred_element_type=jnp.float32)
    if GP != L:
        wr = jax.lax.broadcasted_iota(jnp.int32, (GP, GP), 0) // L
        wc = jax.lax.broadcasted_iota(jnp.int32, (GP, GP), 1) // L
        mask = jnp.where(wr == wc, 0.0, -1e30).astype(jnp.float32)
        s = s + mask[None]
    s = s - jnp.max(s, axis=-1, keepdims=True)
    p = jnp.exp(s)
    p = p * pl.reciprocal(jnp.sum(p, axis=-1, keepdims=True), approx=True)
    p = p.astype(cdt)
    # o[n, c, l] = sum_m v[n, c, m] * p[n, l, m]
    o = jnp.einsum("ncm,nlm->ncl", v, p, preferred_element_type=jnp.float32)
    o_ref[...] = o.astype(o_ref.dtype)


def _largest_divisor_leq(n, k):
    k = max(1, min(n, k))
    while n % k:
        k -= 1
    return k


def _pick_group_width(M, L):
    """Lanes per block along the window axis: multiple of L, 128-aligned and
    dividing M when possible, else the full dim."""
    assert M % L == 0
    if M <= 256:
        return M
    step = (L * 128) // math.gcd(L, 128)          # lcm(L, 128)
    gp = step
    while gp <= min(M, 4096):
        if M % gp == 0:
            return gp
        gp += step
    return M


def _attn_groups_per_block(N, cq, GP, in_dtype, mxu_dtype, budget):
    """VMEM-based NB cap, accounting for (8,128)/(16,128) tile padding."""
    isz = jnp.dtype(in_dtype).itemsize
    sub_in = 8 * (4 // isz)                        # 8 f32 / 16 bf16
    c_in = _round_up(cq, sub_in)
    gp_in = _round_up(GP, 128)
    blk = (2 * 2 + 2) * c_in * gp_in * isz         # q,v double-buffered + o

    csz = jnp.dtype(mxu_dtype).itemsize if mxu_dtype is not None else 4
    sub_c = 8 * (4 // csz)
    c_c = _round_up(cq, sub_c)
    tmp = 2 * _round_up(GP, 8) * _round_up(GP, 128) * 4        # s, p (f32)
    tmp += _round_up(GP, sub_c) * _round_up(GP, 128) * csz     # p cast
    tmp += 2 * c_c * _round_up(GP, 128) * csz                  # q, v casts
    tmp += _round_up(cq, 8) * _round_up(GP, 128) * 4           # o accumulator
    per = blk + tmp
    return max(1, min(N, budget // per))


def packed_window_attention(q, v, L, *, mxu_dtype=None, out_dtype=None):
    N, cq, M = q.shape
    assert v.shape == q.shape and M % L == 0
    out_dtype = out_dtype or q.dtype

    GP = _pick_group_width(M, L)
    nb_cap = _attn_groups_per_block(N, cq, GP, q.dtype, mxu_dtype,
                                    _ATTN_VMEM_BUDGET)
    nb = _largest_divisor_leq(N, nb_cap)           # no wrapper-side padding
    m_steps = M // GP
    # Keep >= 2 grid steps only on chips with two TensorCores (megacore).
    if _MEGACORE and N >= 2 and (N // nb) * m_steps < 2:
        nb = _largest_divisor_leq(N, max(1, -(-N // 2)))

    return pl.pallas_call(
        functools.partial(_window_attn_kernel, L=L, mxu_dtype=mxu_dtype),
        out_shape=jax.ShapeDtypeStruct((N, cq, M), out_dtype),
        grid=(N // nb, m_steps),
        in_specs=[
            pl.BlockSpec((nb, cq, GP), lambda ni, mi: (ni, 0, mi)),
            pl.BlockSpec((nb, cq, GP), lambda ni, mi: (ni, 0, mi)),
        ],
        out_specs=pl.BlockSpec((nb, cq, GP), lambda ni, mi: (ni, 0, mi)),
        compiler_params=pltpu.CompilerParams(
            dimension_semantics=("parallel", "parallel"),
            vmem_limit_bytes=_VMEM_LIMIT),
    )(q, v)


def _pick_pack(n_windows, L, max_lanes=128):
    """How many adjacent windows to pack along the lane axis."""
    if L >= max_lanes:
        return 1
    g = max(1, min(n_windows, max_lanes // L))
    while g > 1 and n_windows % g:
        g -= 1
    return g


# ---------------------------------------------------------------------------
# Fused concat + project_out:  out = w2[:, :cq]@o0 + w2[:, cq:2cq]@o1 + ... + b2
# ---------------------------------------------------------------------------

def _fused_proj_kernel(o0_ref, o1_ref, o2_ref, w0_ref, w1_ref, w2_ref, b_ref,
                       out_ref, *, mxu_dtype=None):
    cdt = jnp.float32 if mxu_dtype is None else mxu_dtype
    acc = jnp.dot(w0_ref[...].astype(cdt), o0_ref[0].astype(cdt),
                  preferred_element_type=jnp.float32)
    acc += jnp.dot(w1_ref[...].astype(cdt), o1_ref[0].astype(cdt),
                   preferred_element_type=jnp.float32)
    acc += jnp.dot(w2_ref[...].astype(cdt), o2_ref[0].astype(cdt),
                   preferred_element_type=jnp.float32)
    out_ref[0] = (acc + b_ref[...].astype(jnp.float32)).astype(out_ref.dtype)


def fused_project_out(o0, o1, o2, w2, b2, *, mxu_dtype=None, out_dtype=None):
    B, cq, M = o0.shape
    C = w2.shape[0]
    assert w2.shape == (C, 3 * cq)
    out_dtype = out_dtype or w2.dtype
    w_splits = [w2[:, i * cq:(i + 1) * cq] for i in range(3)]
    tm = _pick_pixel_tile(M, 2048)
    Mp = pl.cdiv(M, tm) * tm
    if Mp != M:
        pad = ((0, 0), (0, 0), (0, Mp - M))
        o0, o1, o2 = (jnp.pad(t, pad) for t in (o0, o1, o2))
    out = pl.pallas_call(
        functools.partial(_fused_proj_kernel, mxu_dtype=mxu_dtype),
        out_shape=jax.ShapeDtypeStruct((B, C, Mp), out_dtype),
        grid=(B, Mp // tm),
        in_specs=[pl.BlockSpec((1, cq, tm), lambda bi, mi: (bi, 0, mi))] * 3
                + [pl.BlockSpec((C, cq), lambda bi, mi: (0, 0))] * 3
                + [pl.BlockSpec((C, 1), lambda bi, mi: (0, 0))],
        out_specs=pl.BlockSpec((1, C, tm), lambda bi, mi: (bi, 0, mi)),
        compiler_params=pltpu.CompilerParams(
            dimension_semantics=("parallel", "parallel"),
            vmem_limit_bytes=_VMEM_LIMIT),
    )(o0, o1, o2, *w_splits, b2.reshape(C, 1))
    return out[:, :, :M] if Mp != M else out


# ---------------------------------------------------------------------------
# GFE forward (Pallas path)
# ---------------------------------------------------------------------------

def gfe_forward(x, params, *, window_size=4, shifts=0, split_size=1,
                mxu_dtype=None, act_dtype=None):
    """x: (B, C, H, W) NCHW.  Returns (B, C, H, W)."""
    B, C, H, W = x.shape
    assert C % 3 == 0, "channels must be divisible by 3 (torch.split constraint)"
    c2 = (2 * C) // 3
    cq = c2 // 2
    ws = window_size
    ss = split_size
    assert H % ws == 0 and W % ws == 0 and H % ss == 0 and W % ss == 0

    # project_inp: 1x1 conv with BatchNorm folded (inference / running stats).
    # TODO(synk): training-mode BatchNorm (batch statistics) not implemented.
    scale = params["bn_gamma"] * jax.lax.rsqrt(params["bn_var"] + params["bn_eps"])
    w1_eff = params["w1"] * scale[:, None]
    b1_eff = (params["b1"] - params["bn_mean"]) * scale + params["bn_beta"]

    y = pointwise_conv_cf(x.reshape(B, C, H * W), w1_eff, b1_eff,
                          mxu_dtype=mxu_dtype, out_dtype=act_dtype or x.dtype)
    y = y.reshape(B, 2 * C, H, W)

    # -- branch 0: ws x ws windows, g0 adjacent-in-w windows packed per group --
    t0 = y[:, 0:c2]
    if shifts > 0:
        # TODO(synk): fold the cyclic shift into the windowing index_map.
        t0 = jnp.roll(t0, shift=(-shifts, -shifts), axis=(2, 3))
    nh, nw = H // ws, W // ws
    L0 = ws * ws
    g0 = _pick_pack(nw, L0)
    nwg0 = nw // g0
    t0 = t0.reshape(B, c2, nh, ws, nwg0, g0, ws)
    t0 = jnp.transpose(t0, (0, 2, 4, 1, 5, 3, 6)).reshape(
        B * nh * nwg0, c2, g0 * L0)
    o0 = packed_window_attention(t0[:, :cq], t0[:, cq:], L0, mxu_dtype=mxu_dtype)
    o0 = o0.reshape(B, nh, nwg0, cq, g0, ws, ws)
    o0 = jnp.transpose(o0, (0, 3, 1, 5, 2, 4, 6)).reshape(B, cq, H, W)
    if shifts > 0:
        o0 = jnp.roll(o0, shift=(shifts, shifts), axis=(2, 3))
    o0 = o0.reshape(B, cq, H * W)

    # -- branch 1: column attention (dh=H, dw=split_size), packed columns --
    t1 = y[:, c2:2 * c2]
    L1 = H * ss
    nw1 = W // ss
    g1 = _pick_pack(nw1, L1)
    nwg1 = nw1 // g1
    t1 = t1.reshape(B, c2, H, nwg1, g1, ss)
    t1 = jnp.transpose(t1, (0, 3, 1, 4, 2, 5)).reshape(B * nwg1, c2, g1 * L1)
    o1 = packed_window_attention(t1[:, :cq], t1[:, cq:], L1, mxu_dtype=mxu_dtype)
    o1 = o1.reshape(B, nwg1, cq, g1, H, ss)
    o1 = jnp.transpose(o1, (0, 2, 4, 1, 3, 5)).reshape(B, cq, H * W)

    # -- branch 2: row attention (dh=split_size, dw=W).  Row windows are
    # contiguous along the flat pixel axis, so no windowing transpose at all. --
    y_flat = y.reshape(B, 2 * C, H * W)
    # TODO(synk): read q/v straight from y_flat with channel-block offsets in
    # the BlockSpec index_map once cq % 8 == 0; the slice below is one cheap
    # contiguous copy.
    q2 = y_flat[:, 4 * cq:5 * cq]
    v2 = y_flat[:, 5 * cq:6 * cq]
    o2 = packed_window_attention(q2, v2, ss * W, mxu_dtype=mxu_dtype)

    # -- fused concat + project_out (stays NCHW; no concat materialization) --
    out = fused_project_out(o0, o1, o2, params["w2"], params["b2"],
                            mxu_dtype=mxu_dtype, out_dtype=x.dtype)
    return out.reshape(B, C, H, W)


# ---------------------------------------------------------------------------
# Pure-JAX (XLA) reference mirroring the PyTorch module, for verification
# ---------------------------------------------------------------------------

def gfe_reference(x, params, *, window_size=4, shifts=0, split_size=1):
    B, C, H, W = x.shape
    c2 = (2 * C) // 3
    cq = c2 // 2
    ws = window_size

    scale = params["bn_gamma"] / jnp.sqrt(params["bn_var"] + params["bn_eps"])
    w1 = params["w1"] * scale[:, None]
    b1 = (params["b1"] - params["bn_mean"]) * scale + params["bn_beta"]
    y = jnp.einsum("oi,bihw->bohw", w1, x) + b1[None, :, None, None]

    xs = [y[:, i * c2:(i + 1) * c2] for i in range(3)]

    def branch(t, dh, dw):
        nh, nw = H // dh, W // dw
        t = t.reshape(B, 2, cq, nh, dh, nw, dw)
        t = jnp.transpose(t, (1, 0, 3, 5, 4, 6, 2))
        t = t.reshape(2, B * nh * nw, dh * dw, cq)
        q, v = t[0], t[1]
        p = jax.nn.softmax(jnp.einsum("nlc,nmc->nlm", q, q), axis=-1)
        o = jnp.einsum("nlm,nmc->nlc", p, v)
        o = o.reshape(B, nh, nw, dh, dw, cq)
        return jnp.transpose(o, (0, 5, 1, 3, 2, 4)).reshape(B, cq, H, W)

    f0 = xs[0]
    if shifts > 0:
        f0 = jnp.roll(f0, shift=(-shifts, -shifts), axis=(2, 3))
    o0 = branch(f0, ws, ws)
    if shifts > 0:
        o0 = jnp.roll(o0, shift=(shifts, shifts), axis=(2, 3))
    out = jnp.concatenate(
        [o0, branch(xs[1], H, split_size), branch(xs[2], split_size, W)], axis=1)
    return (jnp.einsum("oi,bihw->bohw", params["w2"], out)
            + params["b2"][None, :, None, None])


# ---------------------------------------------------------------------------

if __name__ == "__main__":
    # Channels divisible by 3 (torch.split constraint); H, W divisible by the
    # window size; shifts=0 / split_size=1 (module defaults).
    B, C, H, W = 2, 6, 32, 32
    window_size, shifts, split_size = 4, 0, 1

    key = jax.random.PRNGKey(0)
    ks = jax.random.split(key, 9)
    c_out1 = 2 * C
    params = dict(
        w1=jax.random.normal(ks[0], (c_out1, C), jnp.float32) * 0.2,   # Conv2d(C, 2C, 1)
        b1=jax.random.normal(ks[1], (c_out1,), jnp.float32) * 0.1,
        bn_gamma=jax.random.uniform(ks[2], (c_out1,), jnp.float32, minval=0.5, maxval=1.5),
        bn_beta=jax.random.normal(ks[3], (c_out1,), jnp.float32) * 0.1,
        bn_mean=jax.random.normal(ks[4], (c_out1,), jnp.float32) * 0.1,
        bn_var=jax.random.uniform(ks[5], (c_out1,), jnp.float32, minval=0.5, maxval=1.5),
        bn_eps=1e-5,
        w2=jax.random.normal(ks[6], (C, C), jnp.float32) * 0.2,        # Conv2d(C, C, 1)
        b2=jax.random.normal(ks[7], (C,), jnp.float32) * 0.1,
    )
    x = jax.random.normal(ks[8], (B, C, H, W), jnp.float32)

    # f32 kernel path vs. pure-JAX reference (tolerance covers the approximate
    # EUP reciprocal in the softmax and MXU accumulation differences).
    out = gfe_forward(x, params, window_size=window_size, shifts=shifts,
                      split_size=split_size)
    out = jax.block_until_ready(out)
    ref = jax.block_until_ready(
        gfe_reference(x, params, window_size=window_size, shifts=shifts,
                      split_size=split_size))
    assert out.shape == (B, C, H, W), out.shape
    max_err = float(jnp.max(jnp.abs(out - ref)))
    assert max_err < 1e-2, f"f32 path max err {max_err}"

    # bf16 activations in HBM + bf16 MXU operands (perf path for v6e/v7x);
    # softmax and accumulation stay in f32.
    out_bf16 = gfe_forward(x, params, window_size=window_size, shifts=shifts,
                           split_size=split_size, mxu_dtype=jnp.bfloat16,
                           act_dtype=jnp.bfloat16)
    out_bf16 = jax.block_until_ready(out_bf16)
    max_err_bf16 = float(jnp.max(jnp.abs(out_bf16 - ref)))
    assert max_err_bf16 < 0.25, f"bf16 path max err {max_err_bf16}"

    print("KERNEL_OK")
</pallas_src>

<mosaic_0001>
module attributes {stable_mosaic.version = 11 : i64} {
  func.func @_pw_conv_kernel(%arg0: i32, %arg1: i32, %arg2: memref<1x6x1024xf32, #tpu.memory_space<vmem>>, %arg3: memref<12x6xf32, #tpu.memory_space<vmem>>, %arg4: memref<12x1xf32, #tpu.memory_space<vmem>>, %arg5: memref<1x12x1024xf32, #tpu.memory_space<vmem>>) attributes {dimension_semantics = [#tpu.dimension_semantics<parallel>, #tpu.dimension_semantics<parallel>], iteration_bounds = array<i64: 2, 1>, scalar_prefetch = 0 : i64, scratch_operands = 0 : i64, tpu.core_type = #tpu.core_type<tc>, window_params = [{transform_indices = @transform_0, window_bounds = array<i64: 1, 6, 1024>}, {pipeline_mode = #tpu.pipeline_mode<synchronous>, transform_indices = @transform_1, window_bounds = array<i64: 12, 6>}, {pipeline_mode = #tpu.pipeline_mode<synchronous>, transform_indices = @transform_2, window_bounds = array<i64: 12, 1>}, {transform_indices = @transform_3, window_bounds = array<i64: 1, 12, 1024>}]} {
    %c0 = arith.constant 0 : index
    %c0_0 = arith.constant 0 : index
    %c0_1 = arith.constant 0 : index
    %0 = vector.load %arg2[%c0, %c0_0, %c0_1] : memref<1x6x1024xf32, #tpu.memory_space<vmem>>, vector<1x6x1024xf32>
    %1 = vector.shape_cast %0 : vector<1x6x1024xf32> to vector<6x1024xf32>
    %c0_2 = arith.constant 0 : index
    %c0_3 = arith.constant 0 : index
    %2 = vector.load %arg3[%c0_2, %c0_3] : memref<12x6xf32, #tpu.memory_space<vmem>>, vector<12x6xf32>
    %cst = arith.constant dense<0.000000e+00> : vector<12x1024xf32>
    %3 = tpu.matmul %2, %1, %cst {dimension_numbers = #tpu.dot_dimension_numbers<[1], [0], [0], [1], [0, 0, 1, 1], [], []>} : vector<12x6xf32>, vector<6x1024xf32>, vector<12x1024xf32> -> vector<12x1024xf32>
    %c0_4 = arith.constant 0 : index
    %c0_5 = arith.constant 0 : index
    %4 = vector.load %arg4[%c0_4, %c0_5] : memref<12x1xf32, #tpu.memory_space<vmem>>, vector<12x1xf32>
    %5 = vector.broadcast %4 : vector<12x1xf32> to vector<12x1024xf32>
    %6 = arith.addf %3, %5 : vector<12x1024xf32>
    %c0_6 = arith.constant 0 : index
    %c0_7 = arith.constant 0 : index
    %c0_8 = arith.constant 0 : index
    %7 = vector.load %arg5[%c0_6, %c0_7, %c0_8] : memref<1x12x1024xf32, #tpu.memory_space<vmem>>, vector<1x12x1024xf32>
    %8 = vector.shape_cast %7 : vector<1x12x1024xf32> to vector<12x1024xf32>
    %9 = vector.shape_cast %6 : vector<12x1024xf32> to vector<1x12x1024xf32>
    tpu.vector_store %arg5[%c0_6, %c0_7, %c0_8], %9 {strides = array<i32>} : memref<1x12x1024xf32, #tpu.memory_space<vmem>>, vector<1x12x1024xf32>,
    return
  }
  func.func @transform_0(%arg0: i32, %arg1: i32) -> (i32, i32, i32) {
    %c0_i32 = arith.constant 0 : i32
    %c0_i32_0 = arith.constant 0 : i32
    return %arg0, %c0_i32, %arg1 : i32, i32, i32
  }
  func.func @transform_1(%arg0: i32, %arg1: i32) -> (i32, i32) {
    %c0_i32 = arith.constant 0 : i32
    %c0_i32_0 = arith.constant 0 : i32
    %c0_i32_1 = arith.constant 0 : i32
    return %c0_i32, %c0_i32_0 : i32, i32
  }
  func.func @transform_2(%arg0: i32, %arg1: i32) -> (i32, i32) {
    %c0_i32 = arith.constant 0 : i32
    %c0_i32_0 = arith.constant 0 : i32
    %c0_i32_1 = arith.constant 0 : i32
    return %c0_i32, %c0_i32_0 : i32, i32
  }
  func.func @transform_3(%arg0: i32, %arg1: i32) -> (i32, i32, i32) {
    %c0_i32 = arith.constant 0 : i32
    %c0_i32_0 = arith.constant 0 : i32
    return %arg0, %c0_i32, %arg1 : i32, i32, i32
  }
}

</mosaic_0001>

<bundles_post_ra>
// kernel: tpu_custom_call.1
= control target key start
LH: loop header
LB: loop body
LE: loop exit
PB: predicated region body
PF: predicated region fallthrough
CT: control target
= control target key end

     0   :  { %s777_s12 = smov 0   ;;  %s779_s13 = smov 0   ;;  %s860_s0 = inlined_call_operand.vmem [shape: f32[2,6,1024], index: 0, kind: input, shape index: {}]   ;;  %s861_s1 = inlined_call_operand.vmem [shape: f32[12,6], index: 1, kind: input, shape index: {}]   ;;  %s862_s2 = inlined_call_operand.vmem [shape: f32[12,1], index: 2, kind: input, shape index: {}]   ;;  %s863_s3 = inlined_call_operand.vmem [shape: f32[2,12,1024], index: 3, kind: output, shape index: {}]  }
   0x1   :  { %s781_s14 = smov 0  }
   0x2 LB: > { %s25_s15 = sadd.s32 1, %s749_s13  ;;  %p679_p0 = scmp.ge.s32.totalorder %s753_s14, 1  ;;  %s753_s14 = sphi %s781_s14, %s13_s14   ;;  %s749_s13 = sphi %s779_s13, %s865_s13   ;;  %s745_s12 = sphi %s777_s12, %s864_s12  }
   0x3   : > { %p27_p1 = scmp.ge.s32.totalorder %s25_s15, 2  ;;  %p158_p2 = scmp.lt.s32.totalorder %s753_s14, 3 }
   0x5   : > { %s867_s15 = smov (%p27_p1, %s25_s15), 0  ;;  %p159_p3 = pnand %p679_p0, %p158_p2 }
   0x6   : > { %p191_p4 = scmp.lt.s32.totalorder (!%p159_p3), %s745_s12, 1  ;;  %v755_v0 = vmov (!%p159_p3), 0.0   ;;  %v220_v1 = vld [vmem:[%s862_s2] sm:$0xff] (!%p159_p3)  ;;  %v756_v2 = vmov (!%p159_p3), 0   ;;  %vm239_vm0 = vcmask (!%p159_p3), 1045504   ;;  %vm232_vm1 = vcmask (!%p159_p3), 48128  }
   0x7   : > { %162 = sbr.rel (%p159_p3) target bundleno = 248 (0xf8), region = 32  ;;  %328 = vmatprep.mubr.f32.mxu0 (!%p159_p3), %v755_v0  ;;  %405 = vmatprep.mubr.f32.mxu1 (!%p159_p3), %v755_v0  ;;  %v218_v3 = vld [vmem:[%s861_s1] sm:$0xff] (!%p159_p3)  ;;  %v219_v12 = vld [vmem:[%s861_s1 + $0x8] sm:$0xf] (!%p159_p3) }
   0x8   : > { %730 = vset.pattern.permute.xlu0 (!%p159_p3), %v756_v2  ;;  %v221_v13 = vld [vmem:[%s862_s2 + $0x8] sm:$0xf] (!%p159_p3) }
   0x9   : > { %224 = vperm.xlu0 (!%p159_p3), %730, %v220_v1  }
   0xd   : > { %229 = vperm.xlu0 (!%p159_p3), %730, %v221_v13  }
   0xe   : > { %s869_s12 = smov (!%p191_p4, %s745_s12), 1 }
   0xf   : > { %s702_s18 = sshll.u32 %s869_s12, 6  ;;  %s703_s28 = sshll.u32 %s869_s12, 7 }
  0x10   : > { %s198_s21 = scalar_lea.vmem %s860_s0, %s702_s18  ;;  %s833_s4 = scalar_lea.vmem %s863_s3, %s703_s28 }
  0x11   : > { %v211_v4 = vld [vmem:[%s198_s21 + $0x8] sm:$0x3f]  ;;  %v213_v5 = vld [vmem:[%s198_s21 + $0x18] sm:$0x3f]  ;;  %v210_v6 = vld [vmem:[%s198_s21] sm:$0x3f] }
  0x12   : > { %684 = vmatprep.subr.msk.mxu0 %vm239_vm0, %v211_v4  ;;  %688 = vmatprep.subr.msk.mxu1 %vm239_vm0, %v213_v5  ;;  %v212_v7 = vld [vmem:[%s198_s21 + $0x10] sm:$0x3f]  ;;  %v215_v8 = vld [vmem:[%s198_s21 + $0x28] sm:$0x3f]  ;;  %v217_v9 = vld [vmem:[%s198_s21 + $0x38] sm:$0x3f] }
  0x13   : > { %685 = vmatpush1.msk.msra.mxu0 %vm239_vm0, %v210_v6  ;;  %689 = vmatpush1.msk.msra.mxu1 %vm239_vm0, %v212_v7  ;;  %v214_v10 = vld [vmem:[%s198_s21 + $0x20] sm:$0x3f]  ;;  %v216_v11 = vld [vmem:[%s198_s21 + $0x30] sm:$0x3f] }
  0x14   : > { %686 = vmatmul.mubr.msk.f32.vlgmr.msra.gmra.mrb[0].mxu0 %vm232_vm1, %v218_v3  ;;  %690 = vmatmul.mubr.msk.f32.vlgmr.msra.gmra.mrb[0].mxu1 %vm232_vm1, %v218_v3 }
  0x15   : > { %692 = vmatprep.subr.msk.mxu0 %vm239_vm0, %v215_v8  ;;  %696 = vmatprep.subr.msk.mxu1 %vm239_vm0, %v217_v9 }
  0x16   : > { %693 = vmatpush1.msk.msra.mxu0 %vm239_vm0, %v214_v10  ;;  %697 = vmatpush1.msk.msra.mxu1 %vm239_vm0, %v216_v11 }
  0x17   : > { %334 = vmatprep.mubr.f32.mxu0 %v755_v0  ;;  %411 = vmatprep.mubr.f32.mxu1 %v755_v0 }
  0x18   : > { %687 = vmatmul.mubr.msk.f32.gmra.mrb[2].mxu0 %vm232_vm1, %v219_v12  ;;  %691 = vmatmul.mubr.msk.f32.gmra.mrb[2].mxu1 %vm232_vm1, %v219_v12 }
  0x19   : > { %482 = vmatprep.mubr.f32.mxu0 %v755_v0  ;;  %559 = vmatprep.mubr.f32.mxu1 %v755_v0 }
  0x1c   : > { %694 = vmatmul.mubr.msk.f32.vlgmr.msra.gmra.mrb[4].mxu0 %vm232_vm1, %v218_v3  ;;  %698 = vmatmul.mubr.msk.f32.vlgmr.msra.gmra.mrb[4].mxu1 %vm232_vm1, %v218_v3 }
  0x1d   : > { %488 = vmatprep.mubr.f32.mxu0 %v755_v0  ;;  %565 = vmatprep.mubr.f32.mxu1 %v755_v0 }
  0x20   : > { %695 = vmatmul.mubr.msk.f32.gmra.mrb[6].mxu0 %vm232_vm1, %v219_v12  ;;  %699 = vmatmul.mubr.msk.f32.gmra.mrb[6].mxu1 %vm232_vm1, %v219_v12 }
  0x88   : > { %v225_v14 = vpop.permute.xlu0 %224 }
  0x8c   : > { %v230_v23 = vpop.permute.xlu0 %229 }
  0xe7   : > { %v330_v15 = vpop.f32.mrb[0].mxu0  ;;  %v407_v16 = vpop.f32.mrb[0].mxu1 }
  0xe8   : > { %v331_v17 = vadd.f32 %v330_v15, %v225_v14  ;;  %v408_v18 = vadd.f32 %v407_v16, %v225_v14  ;;  %v332_v19 = vpop.f32.mrb[1].mxu0  ;;  %v409_v20 = vpop.f32.mrb[1].mxu1 }
  0xe9   : > { %v333_v21 = vadd.f32 %v332_v19, %v225_v14  ;;  %v410_v22 = vadd.f32 %v409_v20, %v225_v14 }
  0xea   : > { %572 = vst [vmem:[%s833_s4] sm:$0xff] %v331_v17  ;;  %574 = vst [vmem:[%s833_s4 + $0x10] sm:$0xff] %v408_v18 }
  0xeb   : > { %573 = vst [vmem:[%s833_s4 + $0x8] sm:$0xff] %v333_v21  ;;  %575 = vst [vmem:[%s833_s4 + $0x18] sm:$0xff] %v410_v22  ;;  %v336_v24 = vpop.f32.mrb[2].mxu0  ;;  %v413_v25 = vpop.f32.mrb[2].mxu1 }
  0xec   : > { %v337_v26 = vadd.f32 %v336_v24, %v230_v23  ;;  %v414_v27 = vadd.f32 %v413_v25, %v230_v23  ;;  %v338_v28 = vpop.f32.mrb[3].mxu0  ;;  %v415_v29 = vpop.f32.mrb[3].mxu1 }
  0xed   : > { %v339_v30 = vadd.f32 %v338_v28, %v230_v23  ;;  %v416_v31 = vadd.f32 %v415_v29, %v230_v23 }
  0xee   : > { %580 = vst [vmem:[%s833_s4 + $0x40] sm:$0xf] %v337_v26  ;;  %582 = vst [vmem:[%s833_s4 + $0x50] sm:$0xf] %v414_v27 }
  0xef   : > { %581 = vst [vmem:[%s833_s4 + $0x48] sm:$0xf] %v339_v30  ;;  %583 = vst [vmem:[%s833_s4 + $0x58] sm:$0xf] %v416_v31  ;;  %v484_v32 = vpop.f32.mrb[4].mxu0  ;;  %v561_v33 = vpop.f32.mrb[4].mxu1 }
  0xf0   : > { %v485_v34 = vadd.f32 %v484_v32, %v225_v14  ;;  %v562_v35 = vadd.f32 %v561_v33, %v225_v14  ;;  %v486_v36 = vpop.f32.mrb[5].mxu0  ;;  %v563_v37 = vpop.f32.mrb[5].mxu1 }
  0xf1   : > { %v487_v38 = vadd.f32 %v486_v36, %v225_v14  ;;  %v564_v39 = vadd.f32 %v563_v37, %v225_v14 }
  0xf2   : > { %576 = vst [vmem:[%s833_s4 + $0x20] sm:$0xff] %v485_v34  ;;  %578 = vst [vmem:[%s833_s4 + $0x30] sm:$0xff] %v562_v35 }
  0xf3   : > { %577 = vst [vmem:[%s833_s4 + $0x28] sm:$0xff] %v487_v38  ;;  %579 = vst [vmem:[%s833_s4 + $0x38] sm:$0xff] %v564_v39  ;;  %v490_v40 = vpop.f32.mrb[6].mxu0  ;;  %v567_v41 = vpop.f32.mrb[6].mxu1 }
  0xf4   : > { %v491_v42 = vadd.f32 %v490_v40, %v230_v23  ;;  %v568_v43 = vadd.f32 %v567_v41, %v230_v23  ;;  %v492_v44 = vpop.f32.mrb[7].mxu0  ;;  %v569_v45 = vpop.f32.mrb[7].mxu1 }
  0xf5   : > { %v493_v46 = vadd.f32 %v492_v44, %v230_v23  ;;  %v570_v47 = vadd.f32 %v569_v45, %v230_v23 }
  0xf6   : > { %584 = vst [vmem:[%s833_s4 + $0x60] sm:$0xf] %v491_v42  ;;  %586 = vst [vmem:[%s833_s4 + $0x70] sm:$0xf] %v568_v43 }
  0xf7   : > { %585 = vst [vmem:[%s833_s4 + $0x68] sm:$0xf] %v493_v46  ;;  %587 = vst [vmem:[%s833_s4 + $0x78] sm:$0xf] %v570_v47 }
  0xf8 PF: > { %s13_s14 = sadd.s32 1, %s753_s14   ;;  %s864_s12 = smov %s749_s13 }
  0xf9   : > { %p10_p5 = scmp.ge.s32.totalorder %s13_s14, 4   ;;  %s865_s13 = smov %s867_s15 }
  0xfb   :  { %12 = sbr.rel (!%p10_p5) target bundleno = 2 (0x2), region = 62 }

</bundles_post_ra>
